<compile_context>
chip_gen: v6e
topology: v6e:2x2x1
jax: 0.10.0
libtpu: 0.0.40
codegen_flags: <defaults>
</compile_context>

<pallas_src>
import math

import jax
import jax.numpy as jnp
from jax.experimental import pallas as pl
from jax.experimental.pallas import tpu as pltpu

HID1, HID2, OUT = 128, 64, 1


def _mlp_kernel(x_ref, w1_ref, b1_ref, w2_ref, b2_ref, w3_ref, b3_ref, o_ref):
    # fc1 / fc2 hit the MXU with f32 accumulation; ReLU runs on the VPU.
    x = x_ref[...]
    h1 = jnp.dot(x, w1_ref[...], preferred_element_type=jnp.float32) + b1_ref[...]
    h1 = jnp.maximum(h1, 0.0)
    h2 = jnp.dot(h1, w2_ref[...], preferred_element_type=jnp.float32) + b2_ref[...]
    h2 = jnp.maximum(h2, 0.0)
    # fc3: K=64, N=1 -> VPU multiply + lane reduction instead of a 1-column
    # MXU matmul (which would still pay the full push/pop latency).
    out = jnp.sum(h2 * w3_ref[...], axis=-1, keepdims=True) + b3_ref[...]
    o_ref[...] = out.astype(o_ref.dtype)


def mlp_forward(x, params, *, tm=256):
    """x: (B, input_dim) float32. params: dict of w1,b1,w2,b2,w3,b3."""
    w1, b1 = params["w1"], params["b1"]
    w2, b2 = params["w2"], params["b2"]
    w3, b3 = params["w3"], params["b3"]
    B, D = x.shape
    w3_row = w3.reshape(1, HID2)  # (1, 64) row for VPU broadcast-multiply

    # Batch tiling: single full block for tiny batches, otherwise TM-row tiles
    # (TM multiple of 8/128/256 depending on chip; 256 is a safe default that
    # keeps intermediates register-resident).
    if B <= tm:
        tm_eff, b_pad = B, B
    else:
        tm_eff = tm
        b_pad = math.ceil(B / tm_eff) * tm_eff

    x_p = x if b_pad == B else jnp.pad(x, ((0, b_pad - B), (0, 0)))
    grid = (b_pad // tm_eff,)

    resident = lambda a: pl.BlockSpec(a.shape, lambda i: (0,) * a.ndim)

    # VMEM budget derived from actual buffers (double-buffered x/out tiles,
    # resident weights, headroom for h1/h2 if the compiler spills).
    weight_bytes = sum(
        a.size * a.dtype.itemsize for a in (w1, b1, w2, b2, w3_row, b3)
    )
    vmem_bytes = (
        2 * tm_eff * D * 4            # double-buffered x tiles
        + 2 * tm_eff * OUT * 4        # double-buffered output tiles
        + 2 * weight_bytes            # resident weights (+ slack)
        + 2 * tm_eff * (HID1 + HID2) * 4  # h1/h2 spill headroom
        + (4 << 20)                   # fixed headroom
    )
    vmem_bytes = int(min(max(vmem_bytes, 8 << 20), 64 << 20))

    flops = 2 * B * (D * HID1 + HID1 * HID2 + HID2)
    bytes_accessed = B * D * 4 + B * OUT * 4 + weight_bytes

    out = pl.pallas_call(
        _mlp_kernel,
        out_shape=jax.ShapeDtypeStruct((b_pad, OUT), x.dtype),
        grid=grid,
        in_specs=[
            pl.BlockSpec((tm_eff, D), lambda i: (i, 0)),  # x: streamed per tile
            resident(w1), resident(b1),
            resident(w2), resident(b2),
            resident(w3_row), resident(b3),
        ],
        out_specs=pl.BlockSpec((tm_eff, OUT), lambda i: (i, 0)),
        compiler_params=pltpu.CompilerParams(
            dimension_semantics=("parallel",),  # shard batch across TCs (v7x)
            vmem_limit_bytes=vmem_bytes,
        ),
        cost_estimate=pl.CostEstimate(
            flops=flops, transcendentals=0, bytes_accessed=bytes_accessed
        ),
    )(x_p, w1, b1, w2, b2, w3_row, b3)

    return out[:B] if b_pad != B else out


def init_params(key, input_dim):
    """Deterministic init mimicking nn.Linear's U(-1/sqrt(fan_in), 1/sqrt(fan_in))."""
    dims = [(input_dim, HID1), (HID1, HID2), (HID2, OUT)]
    params = {}
    for i, (fan_in, fan_out) in enumerate(dims, start=1):
        key, kw, kb = jax.random.split(key, 3)
        bound = 1.0 / jnp.sqrt(float(fan_in))
        params[f"w{i}"] = jax.random.uniform(
            kw, (fan_in, fan_out), jnp.float32, -bound, bound)
        params[f"b{i}"] = jax.random.uniform(
            kb, (1, fan_out), jnp.float32, -bound, bound)
    return params


def mlp_reference(x, params):
    h1 = jnp.maximum(x @ params["w1"] + params["b1"], 0.0)
    h2 = jnp.maximum(h1 @ params["w2"] + params["b2"], 0.0)
    return h2 @ params["w3"] + params["b3"]


if __name__ == "__main__":
    key = jax.random.PRNGKey(0)
    k_params, k_x, k_x2 = jax.random.split(key, 3)

    batch, input_dim = 8, 32
    params = init_params(k_params, input_dim)

    # Small single-block case.
    x = jax.random.normal(k_x, (batch, input_dim), jnp.float32)
    out = jax.block_until_ready(mlp_forward(x, params))
    ref = mlp_reference(x, params)
    assert out.shape == (batch, OUT), out.shape
    assert jnp.allclose(out, ref, atol=1e-5, rtol=1e-5), "mismatch vs reference (small)"

    # Multi-tile case exercising the batch grid + tail padding (B % TM != 0).
    batch2 = 300
    x2 = jax.random.normal(k_x2, (batch2, input_dim), jnp.float32)
    out2 = jax.block_until_ready(mlp_forward(x2, params, tm=128))
    ref2 = mlp_reference(x2, params)
    assert out2.shape == (batch2, OUT), out2.shape
    assert jnp.allclose(out2, ref2, atol=1e-5, rtol=1e-5), "mismatch vs reference (tiled)"

    print("KERNEL_OK")
</pallas_src>

<mosaic_0001>
module attributes {stable_mosaic.version = 11 : i64} {
  func.func @_mlp_kernel(%arg0: i32, %arg1: memref<8x32xf32, #tpu.memory_space<vmem>>, %arg2: memref<32x128xf32, #tpu.memory_space<vmem>>, %arg3: memref<1x128xf32, #tpu.memory_space<vmem>>, %arg4: memref<128x64xf32, #tpu.memory_space<vmem>>, %arg5: memref<1x64xf32, #tpu.memory_space<vmem>>, %arg6: memref<1x64xf32, #tpu.memory_space<vmem>>, %arg7: memref<1x1xf32, #tpu.memory_space<vmem>>, %arg8: memref<8x1xf32, #tpu.memory_space<vmem>>) attributes {dimension_semantics = [#tpu.dimension_semantics<parallel>], iteration_bounds = array<i64: 1>, scalar_prefetch = 0 : i64, scratch_operands = 0 : i64, tpu.core_type = #tpu.core_type<tc>, window_params = [{transform_indices = @transform_0, window_bounds = array<i64: 8, 32>}, {pipeline_mode = #tpu.pipeline_mode<synchronous>, transform_indices = @transform_1, window_bounds = array<i64: 32, 128>}, {pipeline_mode = #tpu.pipeline_mode<synchronous>, transform_indices = @transform_2, window_bounds = array<i64: 1, 128>}, {pipeline_mode = #tpu.pipeline_mode<synchronous>, transform_indices = @transform_3, window_bounds = array<i64: 128, 64>}, {pipeline_mode = #tpu.pipeline_mode<synchronous>, transform_indices = @transform_4, window_bounds = array<i64: 1, 64>}, {pipeline_mode = #tpu.pipeline_mode<synchronous>, transform_indices = @transform_5, window_bounds = array<i64: 1, 64>}, {pipeline_mode = #tpu.pipeline_mode<synchronous>, transform_indices = @transform_6, window_bounds = array<i64: 1, 1>}, {transform_indices = @transform_7, window_bounds = array<i64: 8, 1>}]} {
    %c0 = arith.constant 0 : index
    %c0_0 = arith.constant 0 : index
    %0 = vector.load %arg1[%c0, %c0_0] : memref<8x32xf32, #tpu.memory_space<vmem>>, vector<8x32xf32>
    %c0_1 = arith.constant 0 : index
    %c0_2 = arith.constant 0 : index
    %1 = vector.load %arg2[%c0_1, %c0_2] : memref<32x128xf32, #tpu.memory_space<vmem>>, vector<32x128xf32>
    %cst = arith.constant dense<0.000000e+00> : vector<8x128xf32>
    %2 = tpu.matmul %0, %1, %cst {dimension_numbers = #tpu.dot_dimension_numbers<[1], [0], [0], [1], [0, 0, 1, 1], [], []>} : vector<8x32xf32>, vector<32x128xf32>, vector<8x128xf32> -> vector<8x128xf32>
    %c0_3 = arith.constant 0 : index
    %c0_4 = arith.constant 0 : index
    %3 = vector.load %arg3[%c0_3, %c0_4] : memref<1x128xf32, #tpu.memory_space<vmem>>, vector<1x128xf32>
    %4 = vector.broadcast %3 : vector<1x128xf32> to vector<8x128xf32>
    %5 = arith.addf %2, %4 : vector<8x128xf32>
    %cst_5 = arith.constant 0.000000e+00 : f32
    %6 = vector.broadcast %cst_5 : f32 to vector<8x128xf32>
    %7 = arith.maximumf %5, %6 : vector<8x128xf32>
    %c0_6 = arith.constant 0 : index
    %c0_7 = arith.constant 0 : index
    %8 = vector.load %arg4[%c0_6, %c0_7] : memref<128x64xf32, #tpu.memory_space<vmem>>, vector<128x64xf32>
    %cst_8 = arith.constant dense<0.000000e+00> : vector<8x64xf32>
    %9 = tpu.matmul %7, %8, %cst_8 {dimension_numbers = #tpu.dot_dimension_numbers<[1], [0], [0], [1], [0, 0, 1, 1], [], []>} : vector<8x128xf32>, vector<128x64xf32>, vector<8x64xf32> -> vector<8x64xf32>
    %c0_9 = arith.constant 0 : index
    %c0_10 = arith.constant 0 : index
    %10 = vector.load %arg5[%c0_9, %c0_10] : memref<1x64xf32, #tpu.memory_space<vmem>>, vector<1x64xf32>
    %11 = vector.broadcast %10 : vector<1x64xf32> to vector<8x64xf32>
    %12 = arith.addf %9, %11 : vector<8x64xf32>
    %cst_11 = arith.constant 0.000000e+00 : f32
    %13 = vector.broadcast %cst_11 : f32 to vector<8x64xf32>
    %14 = arith.maximumf %12, %13 : vector<8x64xf32>
    %c0_12 = arith.constant 0 : index
    %c0_13 = arith.constant 0 : index
    %15 = vector.load %arg6[%c0_12, %c0_13] : memref<1x64xf32, #tpu.memory_space<vmem>>, vector<1x64xf32>
    %16 = vector.broadcast %15 : vector<1x64xf32> to vector<8x64xf32>
    %17 = arith.mulf %14, %16 : vector<8x64xf32>
    %cst_14 = arith.constant dense<0.000000e+00> : vector<8xf32>
    %18 = vector.multi_reduction <add>, %17, %cst_14 [1] : vector<8x64xf32> to vector<8xf32>
    %19 = vector.shape_cast %18 : vector<8xf32> to vector<8x1xf32>
    %c0_15 = arith.constant 0 : index
    %c0_16 = arith.constant 0 : index
    %20 = vector.load %arg7[%c0_15, %c0_16] : memref<1x1xf32, #tpu.memory_space<vmem>>, vector<1x1xf32>
    %21 = vector.broadcast %20 : vector<1x1xf32> to vector<8x1xf32>
    %22 = arith.addf %19, %21 : vector<8x1xf32>
    %c0_17 = arith.constant 0 : index
    %c0_18 = arith.constant 0 : index
    %23 = vector.load %arg8[%c0_17, %c0_18] : memref<8x1xf32, #tpu.memory_space<vmem>>, vector<8x1xf32>
    tpu.vector_store %arg8[%c0_17, %c0_18], %22 {strides = array<i32>} : memref<8x1xf32, #tpu.memory_space<vmem>>, vector<8x1xf32>,
    return
  }
  func.func @transform_0(%arg0: i32) -> (i32, i32) {
    %c0_i32 = arith.constant 0 : i32
    %c0_i32_0 = arith.constant 0 : i32
    return %arg0, %c0_i32 : i32, i32
  }
  func.func @transform_1(%arg0: i32) -> (i32, i32) {
    %c0_i32 = arith.constant 0 : i32
    %c0_i32_0 = arith.constant 0 : i32
    %c0_i32_1 = arith.constant 0 : i32
    return %c0_i32, %c0_i32_0 : i32, i32
  }
  func.func @transform_2(%arg0: i32) -> (i32, i32) {
    %c0_i32 = arith.constant 0 : i32
    %c0_i32_0 = arith.constant 0 : i32
    %c0_i32_1 = arith.constant 0 : i32
    return %c0_i32, %c0_i32_0 : i32, i32
  }
  func.func @transform_3(%arg0: i32) -> (i32, i32) {
    %c0_i32 = arith.constant 0 : i32
    %c0_i32_0 = arith.constant 0 : i32
    %c0_i32_1 = arith.constant 0 : i32
    return %c0_i32, %c0_i32_0 : i32, i32
  }
  func.func @transform_4(%arg0: i32) -> (i32, i32) {
    %c0_i32 = arith.constant 0 : i32
    %c0_i32_0 = arith.constant 0 : i32
    %c0_i32_1 = arith.constant 0 : i32
    return %c0_i32, %c0_i32_0 : i32, i32
  }
  func.func @transform_5(%arg0: i32) -> (i32, i32) {
    %c0_i32 = arith.constant 0 : i32
    %c0_i32_0 = arith.constant 0 : i32
    %c0_i32_1 = arith.constant 0 : i32
    return %c0_i32, %c0_i32_0 : i32, i32
  }
  func.func @transform_6(%arg0: i32) -> (i32, i32) {
    %c0_i32 = arith.constant 0 : i32
    %c0_i32_0 = arith.constant 0 : i32
    %c0_i32_1 = arith.constant 0 : i32
    return %c0_i32, %c0_i32_0 : i32, i32
  }
  func.func @transform_7(%arg0: i32) -> (i32, i32) {
    %c0_i32 = arith.constant 0 : i32
    %c0_i32_0 = arith.constant 0 : i32
    return %arg0, %c0_i32 : i32, i32
  }
}

</mosaic_0001>

<bundles_post_ra>
// kernel: tpu_custom_call.1
= control target key start
LH: loop header
LB: loop body
LE: loop exit
PB: predicated region body
PF: predicated region fallthrough
CT: control target
= control target key end

     0   :  { %v310_v0 = vmov 0.0   ;;  %vm311_vm0 = vmmov 0   ;;  %vm40_vm1 = vcmask 261120   ;;  %vm217_vm2 = vcmask 523264   ;;  %s454_s1 = inlined_call_operand.vmem [shape: f32[32,128], index: 1, kind: input, shape index: {}]   ;;  %s455_s3 = inlined_call_operand.vmem [shape: f32[128,64], index: 3, kind: input, shape index: {}]   ;;  %s456_s0 = inlined_call_operand.vmem [shape: f32[8,32], index: 0, kind: input, shape index: {}]   ;;  %s457_s2 = inlined_call_operand.vmem [shape: f32[1,128], index: 2, kind: input, shape index: {}]   ;;  %s458_s6 = inlined_call_operand.<no memory space> [shape: f32[1,1], index: 6, kind: input, shape index: {}]   ;;  %s459_s4 = inlined_call_operand.vmem [shape: f32[1,64], index: 4, kind: input, shape index: {}]   ;;  %s460_s5 = inlined_call_operand.vmem [shape: f32[1,64], index: 5, kind: input, shape index: {}]   ;;  %s461_s7 = inlined_call_operand.vmem [shape: f32[8,1], index: 7, kind: output, shape index: {}]  }
   0x1   :  { %262 = vmatprep.subr.mxu0 %v310_v0  ;;  %v32_v1 = vld [vmem:[%s454_s1 + $0x18] sm:$0xff]  ;;  %v31_v2 = vld [vmem:[%s454_s1 + $0x10] sm:$0xff]  ;;  %270 = vmatprep.mubr.msk.f32.mxu0 %vm311_vm0, %v310_v0  ;;  %v30_v4 = vld [vmem:[%s454_s1 + $0x8] sm:$0xff]  ;;  %v12_v27 = vstv %s458_s6  ;;  %vm229_vm3 = vcmask 7168  }
   0x2   :  { %263 = vmatpush3.msra.mxu0 %v32_v1  ;;  %273 = vmatprep.subr.mxu1 %v310_v0  ;;  %v130_v3 = vld [vmem:[%s455_s3 + $0x78] sm:$0xff]  ;;  %v129_v5 = vld [vmem:[%s455_s3 + $0x70] sm:$0xff]  ;;  %v128_v6 = vld [vmem:[%s455_s3 + $0x68] sm:$0xff]  ;;  %13 = vst [vmem:[#allocation2] sm:$0x1] %v12_v27 }
   0x3   :  { %264 = vmatprep.subr.mxu0 %v310_v0  ;;  %274 = vmatpush3.msra.mxu1 %v130_v3  ;;  %v29_v7 = vld [vmem:[%s454_s1] sm:$0xff]  ;;  %v126_v10 = vld [vmem:[%s455_s3 + $0x58] sm:$0xff]  ;;  %v125_v11 = vld [vmem:[%s455_s3 + $0x50] sm:$0xff] }
   0x4   :  { %265 = vmatpush3.msra.mxu0 %v31_v2  ;;  %275 = vmatprep.subr.mxu1 %v310_v0  ;;  %v28_v8 = vld [vmem:[%s456_s0] sm:$0xff]  ;;  %v124_v12 = vld [vmem:[%s455_s3 + $0x48] sm:$0xff]  ;;  %v122_v14 = vld [vmem:[%s455_s3 + $0x38] sm:$0xff] }
   0x5   :  { %266 = vmatprep.subr.mxu0 %v310_v0  ;;  %276 = vmatpush3.msra.mxu1 %v129_v5  ;;  %v127_v9 = vld [vmem:[%s455_s3 + $0x60] sm:$0xff]  ;;  %v121_v15 = vld [vmem:[%s455_s3 + $0x30] sm:$0xff]  ;;  %v120_v16 = vld [vmem:[%s455_s3 + $0x28] sm:$0xff] }
   0x6   :  { %267 = vmatpush3.msra.mxu0 %v30_v4  ;;  %277 = vmatprep.subr.mxu1 %v310_v0  ;;  %v123_v13 = vld [vmem:[%s455_s3 + $0x40] sm:$0xff]  ;;  %v118_v18 = vld [vmem:[%s455_s3 + $0x18] sm:$0xff]  ;;  %v117_v19 = vld [vmem:[%s455_s3 + $0x10] sm:$0xff] }
   0x7   :  { %268 = vmatprep.subr.mxu0 %v310_v0  ;;  %278 = vmatpush3.msra.mxu1 %v128_v6  ;;  %v119_v17 = vld [vmem:[%s455_s3 + $0x20] sm:$0xff]  ;;  %v116_v20 = vld [vmem:[%s455_s3 + $0x8] sm:$0xff] }
   0x8   :  { %269 = vmatpush3.msra.mxu0 %v29_v7  ;;  %279 = vmatprep.subr.mxu1 %v310_v0  ;;  %v115_v21 = vld [vmem:[%s455_s3] sm:$0xff] }
   0x9   :  { %271 = vmatmul.mubr.msk.f32.vlgmr.msra.gmra.mxu0 %vm40_vm1, %v28_v8  ;;  %280 = vmatpush3.msra.mxu1 %v127_v9  ;;  %v235_v22 = vld [vmem:[%s457_s2] ss:$0 sm:$0xff] }
   0xa   :  { %281 = vmatprep.subr.mxu1 %v310_v0  ;;  %305 = vmatprep.mubr.msk.f32.mxu1 %vm311_vm0, %v310_v0  ;;  %v237_v28 = vld [vmem:[%s459_s4] ss:$0 sm:$0xff] }
   0xb   :  { %282 = vmatpush3.msra.mxu1 %v126_v10  ;;  %v238_v32 = vld [vmem:[%s460_s5] ss:$0 sm:$0xff] }
   0xc   :  { %283 = vmatprep.subr.mxu1 %v310_v0  ;;  %v239_v36 = vld [vmem:[#allocation2] ss:$0 sm:$0xff] }
   0xd   :  { %284 = vmatpush3.msra.mxu1 %v125_v11 }
   0xe   :  { %285 = vmatprep.subr.mxu1 %v310_v0 }
   0xf   :  { %286 = vmatpush3.msra.mxu1 %v124_v12 }
  0x10   :  { %287 = vmatprep.subr.mxu1 %v310_v0 }
  0x11   :  { %288 = vmatpush3.msra.mxu1 %v123_v13 }
  0x12   :  { %289 = vmatprep.subr.mxu1 %v310_v0 }
  0x13   :  { %290 = vmatpush3.msra.mxu1 %v122_v14 }
  0x14   :  { %291 = vmatprep.subr.mxu1 %v310_v0 }
  0x15   :  { %292 = vmatpush3.msra.mxu1 %v121_v15 }
  0x16   :  { %293 = vmatprep.subr.mxu1 %v310_v0 }
  0x17   :  { %294 = vmatpush3.msra.mxu1 %v120_v16 }
  0x18   :  { %295 = vmatprep.subr.mxu1 %v310_v0 }
  0x19   :  { %296 = vmatpush3.msra.mxu1 %v119_v17 }
  0x1a   :  { %297 = vmatprep.subr.mxu1 %v310_v0 }
  0x1b   :  { %298 = vmatpush3.msra.mxu1 %v118_v18 }
  0x1c   :  { %299 = vmatprep.subr.mxu1 %v310_v0 }
  0x1d   :  { %300 = vmatpush3.msra.mxu1 %v117_v19 }
  0x1e   :  { %301 = vmatprep.subr.mxu1 %v310_v0 }
  0x1f   :  { %302 = vmatpush3.msra.mxu1 %v116_v20 }
  0x20   :  { %303 = vmatprep.subr.mxu1 %v310_v0 }
  0x21   :  { %304 = vmatpush3.msra.mxu1 %v115_v21 }
  0xc9   :  { %v110_v23 = vpop.f32.mrf.mxu0 }
  0xca   :  { %v111_v24 = vadd.f32 %v235_v22, %v110_v23 }
  0xcb   :  { %v272_v25 = vpop.f32.mrf.mxu0 }
  0xcc   :  { %v114_v26 = vmax.f32 %v111_v24, 0.0 }
  0xce   :  { %306 = vmatmul.mubr.f32.vlgmr.msra.gmra.mxu1 %v114_v26 }
 0x18e   :  { %v204_v29 = vpop.f32.mrf.mxu1 }
 0x18f   :  { %v205_v30 = vadd.f32 %v237_v28, %v204_v29 }
 0x190   :  { %v307_v31 = vpop.f32.mrf.mxu1 }
 0x191   :  { %v208_v33 = vmax.f32 %v205_v30, 0.0 }
 0x193   :  { %v216_v34 = vmul.f32 %v238_v32, %v208_v33 }
 0x195   :  { %v218_v35 = vsel %vm217_vm2, %v216_v34, 0.0 }
 0x196   :  { %219 = vadd.xlane.f32.xlu0 %v218_v35 }
 0x21f   :  { %v220_v37 = vpop.xlane.xlu0 %219 }
 0x220   :  { %v228_v38 = vadd.f32 %v239_v36, %v220_v37 }
 0x222   :  { %230 = vst.msk [vmem:[%s461_s7] sm:$0xff] %vm229_vm3, %v228_v38 }

</bundles_post_ra>
